<compile_context>
chip_gen: v7x
topology: tpu7x:2x2x1
jax: 0.10.0
libtpu: 0.0.40
codegen_flags: <defaults>
</compile_context>

<pallas_src>
import math

import jax
import jax.numpy as jnp
from jax.experimental import pallas as pl
from jax.experimental.pallas import tpu as pltpu

NUM_CLASSES = 10      # MNIST: data.c == 10
MARGIN = 0.5
SCALE = 64.0
CLAMP_EPS = 1e-7

_COS_M = math.cos(MARGIN)
_SIN_M = math.sin(MARGIN)


def arcloss_kernel(logits_ref, target_ref, out_ref):
    # Class-major tile: logits (C, TB) — classes on sublanes, batch on lanes.
    #                   target (1, TB) int32; out (1, TB) f32 per-example loss.
    logits = logits_ref[...].astype(jnp.float32)                      # (C, TB)
    tgt = target_ref[...]                                             # (1, TB) i32
    C, TB = logits.shape

    # Boolean target mask (select form: no int->f32 convert, no (C,TB) multiplies).
    row = jax.lax.broadcasted_iota(jnp.int32, (C, TB), 0)
    is_tgt = row == tgt                                               # (C, TB) bool

    # Original target logit per batch column (cheap 2-vreg sublane reduce).
    orig = jnp.sum(jnp.where(is_tgt, logits, 0.0), axis=0, keepdims=True)   # (1, TB)
    orig_c = jnp.clip(orig, -1.0 + CLAMP_EPS, 1.0 - CLAMP_EPS)

    # marginal target logit: cos(acos(x) + m) = x*cos(m) - sqrt(1-x^2)*sin(m)
    marginal = orig_c * _COS_M - jnp.sqrt(1.0 - orig_c * orig_c) * _SIN_M
    diff = marginal - orig_c                                          # (1, TB), clamped base

    # Modified, scaled logits: target row gets +diff, others unchanged
    # (identical to logits + one_hot*diff since only the target row changes).
    mod = jnp.where(is_tgt, logits + diff, logits) * SCALE            # (C, TB)

    # Softmax over the class (sublane) axis — one exact reciprocal per column.
    mmax = jnp.max(mod, axis=0, keepdims=True)                        # (1, TB)
    e = jnp.exp(mod - mmax)                                           # (C, TB)
    inv_sum = 1.0 / jnp.sum(e, axis=0, keepdims=True)                 # (1, TB)
    probas = e * inv_sum                                              # (C, TB)

    # F.cross_entropy(probas, target) = logsumexp(probas) - probas[target].
    # probas in (0, 1] so exp(probas) <= e — no max-subtraction required.
    lse = jnp.log(jnp.sum(jnp.exp(probas), axis=0, keepdims=True))    # (1, TB)

    # Target probability recovered analytically from (1, TB) per-column scalars already
    # held in vregs — bit-identical to probas[target], no extra masked (C, TB) reduce.
    mod_t = (orig + diff) * SCALE
    tgt_p = jnp.exp(mod_t - mmax) * inv_sum                           # (1, TB)

    out_ref[...] = lse - tgt_p


def _round_up(x, m):
    return ((x + m - 1) // m) * m


def _choose_tile_b(B, tile_b):
    """Batch-tile width (lanes). Defaults sized per the v5e/v6e/v7x review guidance."""
    b_cols = _round_up(B, 128)
    if tile_b is not None:
        return min(_round_up(tile_b, 128), b_cols)
    # >= ~8 grid steps for large B (keeps both v7x TensorCores fed via the "parallel"
    # axis); floor 8192 cols (~360 KiB of HBM traffic/step) to amortize the ~0.35 us
    # per-step overhead; cap 32768 cols so the double-buffered working set
    # (~256 B/col with sublane padding -> ~8 MiB) fits v5e's 16 MiB default scoped VMEM.
    tb = _round_up(pl.cdiv(B, 8), 128)
    tb = max(8192, min(tb, 32768))
    return min(tb, b_cols)


def arc_loss(logits, target, *, tile_b=None, class_major=False):
    """ArcFace loss (scalar).

    logits: (B, C) cosine logits (f32 or bf16) as in the PyTorch module, or (C, B) if
            class_major=True. Prefer class_major=True with logits produced directly as
            W_norm @ x_norm.T: it removes a full read+write HBM transpose pass that
            otherwise costs ~2x the kernel's own HBM traffic.
    target: (B,) int class ids.
    """
    if class_major:
        C, B = logits.shape
        logits_cm = logits                                            # (C, B), no extra HBM pass
    else:
        B, C = logits.shape
        # Module-compatible path; the transpose is a separate XLA copy (read+write of the
        # whole slab). Emit class-major logits upstream and pass class_major=True to avoid it.
        logits_cm = logits.T                                          # (C, B)

    TB = _choose_tile_b(B, tile_b)
    target2d = target.astype(jnp.int32).reshape(1, B)

    # Ragged grid: no jnp.pad — the last tile reads out-of-bounds garbage columns
    # (column-local by construction) and its out-of-bounds writes are dropped.
    per_example = pl.pallas_call(
        arcloss_kernel,
        out_shape=jax.ShapeDtypeStruct((1, B), jnp.float32),
        grid=(pl.cdiv(B, TB),),
        in_specs=[
            pl.BlockSpec((C, TB), lambda i: (0, i)),
            pl.BlockSpec((1, TB), lambda i: (0, i)),
        ],
        out_specs=pl.BlockSpec((1, TB), lambda i: (0, i)),
        compiler_params=pltpu.CompilerParams(
            dimension_semantics=("parallel",),
        ),
    )(logits_cm, target2d)

    # Final mean in the wrapper; the (1, B) output contains only valid columns.
    return jnp.mean(per_example[0])


def arc_loss_ref(logits, target):
    """Pure-JAX reference mirroring the PyTorch forward, for verification."""
    B, C = logits.shape
    logits = logits.astype(jnp.float32)
    one_hot = jax.nn.one_hot(target, C, dtype=jnp.float32)
    orig = jnp.sum(logits * one_hot, axis=1, keepdims=True)
    orig_c = jnp.clip(orig, -1.0 + CLAMP_EPS, 1.0 - CLAMP_EPS)
    marginal = jnp.cos(jnp.arccos(orig_c) + MARGIN)
    diff = marginal - orig_c
    mod = (logits + one_hot * diff) * SCALE
    probas = jax.nn.softmax(mod, axis=1)
    logp = jax.nn.log_softmax(probas, axis=1)
    return -jnp.mean(jnp.sum(logp * one_hot, axis=1))


if __name__ == "__main__":
    # TODO(synk): the fastai MNIST dataloader/augmentation setup in the original file is
    # data plumbing, not part of the forward pass; it is replaced by synthetic inputs.
    key = jax.random.PRNGKey(0)
    k1, k2, k3, k4 = jax.random.split(key, 4)

    # small case (original toy shape; single ragged tile, B < 128)
    B, C = 8, NUM_CLASSES
    logits = jax.random.uniform(k1, (B, C), jnp.float32, minval=-1.0, maxval=1.0)
    target = jax.random.randint(k2, (B,), 0, C, dtype=jnp.int32)

    loss = arc_loss(logits, target)
    jax.block_until_ready(loss)
    ref = arc_loss_ref(logits, target)
    assert jnp.allclose(loss, ref, rtol=1e-5, atol=1e-5), (loss, ref)

    # class-major fast path (no wrapper-side transpose HBM pass) must match
    loss_cm = arc_loss(logits.T, target, class_major=True)
    jax.block_until_ready(loss_cm)
    assert jnp.allclose(loss_cm, ref, rtol=1e-5, atol=1e-5), (loss_cm, ref)

    # multi-tile case with a ragged (unpadded) last tile: 3 tiles of 128, 84 OOB tail cols
    B2 = 300
    logits2 = jax.random.uniform(k3, (B2, C), jnp.float32, minval=-1.0, maxval=1.0)
    target2 = jax.random.randint(k4, (B2,), 0, C, dtype=jnp.int32)

    loss2 = arc_loss(logits2, target2, tile_b=128)
    jax.block_until_ready(loss2)
    ref2 = arc_loss_ref(logits2, target2)
    assert jnp.allclose(loss2, ref2, rtol=1e-5, atol=1e-5), (loss2, ref2)

    print("KERNEL_OK")
</pallas_src>

<mosaic_0001>
module attributes {stable_mosaic.version = 11 : i64} {
  func.func @arcloss_kernel(%arg0: i32, %arg1: memref<10x128xf32, #tpu.memory_space<vmem>>, %arg2: memref<1x128xi32, #tpu.memory_space<vmem>>, %arg3: memref<1x128xf32, #tpu.memory_space<vmem>>) attributes {dimension_semantics = [#tpu.dimension_semantics<parallel>], iteration_bounds = array<i64: 1>, scalar_prefetch = 0 : i64, scratch_operands = 0 : i64, tpu.core_type = #tpu.core_type<tc>, window_params = [{transform_indices = @transform_0, window_bounds = array<i64: 10, 128>}, {transform_indices = @transform_1, window_bounds = array<i64: 1, 128>}, {transform_indices = @transform_2, window_bounds = array<i64: 1, 128>}]} {
    %c0 = arith.constant 0 : index
    %c0_0 = arith.constant 0 : index
    %0 = vector.load %arg1[%c0, %c0_0] : memref<10x128xf32, #tpu.memory_space<vmem>>, vector<10x128xf32>
    %c0_1 = arith.constant 0 : index
    %c0_2 = arith.constant 0 : index
    %1 = vector.load %arg2[%c0_1, %c0_2] : memref<1x128xi32, #tpu.memory_space<vmem>>, vector<1x128xi32>
    %2 = tpu.iota {dimensions = array<i32: 0>} : vector<10x128xi32>
    %3 = vector.broadcast %1 : vector<1x128xi32> to vector<10x128xi32>
    %4 = arith.cmpi eq, %2, %3 : vector<10x128xi32>
    %cst = arith.constant 0.000000e+00 : f32
    %5 = vector.broadcast %cst : f32 to vector<10x128xf32>
    %6 = arith.select %4, %0, %5 : vector<10x128xi1>, vector<10x128xf32>
    %cst_3 = arith.constant dense<0.000000e+00> : vector<128xf32>
    %7 = vector.multi_reduction <add>, %6, %cst_3 [0] : vector<10x128xf32> to vector<128xf32>
    %8 = vector.shape_cast %7 : vector<128xf32> to vector<1x128xf32>
    %cst_4 = arith.constant -0.99999988 : f32
    %cst_5 = arith.constant 0.99999988 : f32
    %9 = vector.broadcast %cst_4 : f32 to vector<1x128xf32>
    %10 = arith.maximumf %9, %8 : vector<1x128xf32>
    %11 = vector.broadcast %cst_5 : f32 to vector<1x128xf32>
    %12 = arith.minimumf %11, %10 : vector<1x128xf32>
    %cst_6 = arith.constant 0.87758255 : f32
    %13 = vector.broadcast %cst_6 : f32 to vector<1x128xf32>
    %14 = arith.mulf %12, %13 : vector<1x128xf32>
    %15 = arith.mulf %12, %12 : vector<1x128xf32>
    %cst_7 = arith.constant 1.000000e+00 : f32
    %16 = vector.broadcast %cst_7 : f32 to vector<1x128xf32>
    %17 = arith.subf %16, %15 : vector<1x128xf32>
    %18 = math.sqrt %17 : vector<1x128xf32>
    %cst_8 = arith.constant 0.47942555 : f32
    %19 = vector.broadcast %cst_8 : f32 to vector<1x128xf32>
    %20 = arith.mulf %18, %19 : vector<1x128xf32>
    %21 = arith.subf %14, %20 : vector<1x128xf32>
    %22 = arith.subf %21, %12 : vector<1x128xf32>
    %23 = vector.broadcast %22 : vector<1x128xf32> to vector<10x128xf32>
    %24 = arith.addf %0, %23 : vector<10x128xf32>
    %25 = arith.select %4, %24, %0 : vector<10x128xi1>, vector<10x128xf32>
    %cst_9 = arith.constant 6.400000e+01 : f32
    %26 = vector.broadcast %cst_9 : f32 to vector<10x128xf32>
    %27 = arith.mulf %25, %26 : vector<10x128xf32>
    %cst_10 = arith.constant dense<0xFF800000> : vector<128xf32>
    %28 = vector.multi_reduction <maximumf>, %27, %cst_10 [0] : vector<10x128xf32> to vector<128xf32>
    %29 = vector.shape_cast %28 : vector<128xf32> to vector<1x128xf32>
    %30 = vector.broadcast %29 : vector<1x128xf32> to vector<10x128xf32>
    %31 = arith.subf %27, %30 : vector<10x128xf32>
    %32 = math.exp %31 : vector<10x128xf32>
    %cst_11 = arith.constant dense<0.000000e+00> : vector<128xf32>
    %33 = vector.multi_reduction <add>, %32, %cst_11 [0] : vector<10x128xf32> to vector<128xf32>
    %34 = vector.shape_cast %33 : vector<128xf32> to vector<1x128xf32>
    %cst_12 = arith.constant 1.000000e+00 : f32
    %35 = vector.broadcast %cst_12 : f32 to vector<1x128xf32>
    %36 = arith.divf %35, %34 : vector<1x128xf32>
    %37 = vector.broadcast %36 : vector<1x128xf32> to vector<10x128xf32>
    %38 = arith.mulf %32, %37 : vector<10x128xf32>
    %39 = math.exp %38 : vector<10x128xf32>
    %cst_13 = arith.constant dense<0.000000e+00> : vector<128xf32>
    %40 = vector.multi_reduction <add>, %39, %cst_13 [0] : vector<10x128xf32> to vector<128xf32>
    %41 = vector.shape_cast %40 : vector<128xf32> to vector<1x128xf32>
    %42 = math.log %41 : vector<1x128xf32>
    %43 = arith.addf %8, %22 : vector<1x128xf32>
    %cst_14 = arith.constant 6.400000e+01 : f32
    %44 = vector.broadcast %cst_14 : f32 to vector<1x128xf32>
    %45 = arith.mulf %43, %44 : vector<1x128xf32>
    %46 = arith.subf %45, %29 : vector<1x128xf32>
    %47 = math.exp %46 : vector<1x128xf32>
    %48 = arith.mulf %47, %36 : vector<1x128xf32>
    %49 = arith.subf %42, %48 : vector<1x128xf32>
    %c0_15 = arith.constant 0 : index
    %c0_16 = arith.constant 0 : index
    %50 = vector.load %arg3[%c0_15, %c0_16] : memref<1x128xf32, #tpu.memory_space<vmem>>, vector<1x128xf32>
    tpu.vector_store %arg3[%c0_15, %c0_16], %49 {strides = array<i32>} : memref<1x128xf32, #tpu.memory_space<vmem>>, vector<1x128xf32>,
    return
  }
  func.func @transform_0(%arg0: i32) -> (i32, i32) {
    %c0_i32 = arith.constant 0 : i32
    %c0_i32_0 = arith.constant 0 : i32
    return %c0_i32, %arg0 : i32, i32
  }
  func.func @transform_1(%arg0: i32) -> (i32, i32) {
    %c0_i32 = arith.constant 0 : i32
    %c0_i32_0 = arith.constant 0 : i32
    return %c0_i32, %arg0 : i32, i32
  }
  func.func @transform_2(%arg0: i32) -> (i32, i32) {
    %c0_i32 = arith.constant 0 : i32
    %c0_i32_0 = arith.constant 0 : i32
    return %c0_i32, %arg0 : i32, i32
  }
}

</mosaic_0001>

<bundles_post_ra>
// kernel: tpu_custom_call.1
= control target key start
LH: loop header
LB: loop body
LE: loop exit
PB: predicated region body
PF: predicated region fallthrough
CT: control target
= control target key end

     0   :  { %v15_v0 = vlaneseq  ;;  %s206_s0 = inlined_call_operand.vmem [shape: f32[10,8], index: 0, kind: input, shape index: {}]   ;;  %s207_s1 = inlined_call_operand.vmem [shape: s32[1,8], index: 1, kind: input, shape index: {}]   ;;  %s208_s2 = inlined_call_operand.hbm [shape: f32[1,8], index: 2, kind: output, shape index: {}]  }
   0x1   :  { %v118_v1 = vld [vmem:[%s207_s1] ss:$0 sm:$0xff] }
   0x2   :  { %7 = vsyncpa [#allocation3], 0  ;;  %v16_v2 = vshrl.u32 %v15_v0, 7  ;;  %v12_v3 = vld [vmem:[%s206_s0] sm:$0xff]  ;;  %v13_v4 = vld [vmem:[%s206_s0 + $0x8] sm:$0x3] }
   0x3   :  { %vm26_vm1 = vcmask 1041408   ;;  %s161_s0 = smov [#allocation2]  }
   0x4   :  { %v17_v5 = vadd.s32 8, %v16_v2  ;;  %vm22_vm0 = vcmp.eq.s32.totalorder %v16_v2, %v118_v1  ;;  %s110_s1 = sshll.u32 %s161_s0, 4  ;;  %s111_s1 = int_to_ptr.vmem [resolvable:$true] %s110_s1 }
   0x5   :  { %v24_v6 = vsel %vm22_vm0, %v12_v3, 0.0  ;;  %s137_s15 = scalar_lea.vmem %s111_s1, 16  ;;  %s141_s16 = scalar_lea.vmem %s111_s1, 32 }
   0x6   :  { %vm23_vm2 = vcmp.eq.s32.totalorder %v17_v5, %v118_v1  ;;  %p138_p0 = scmp.ne.s32.totalorder %s111_s1, %s137_s15  ;;  %p142_p1 = scmp.lt.s32.totalorder %s111_s1, %s111_s1 }
   0x7   :  { %v25_v7 = vsel %vm23_vm2, %v13_v4, 0.0  ;;  %p143_p2 = scmp.lt.s32.totalorder %s141_s16, %s137_s15 }
   0x8   :  { %v27_v8 = vsel %vm26_vm1, %v25_v7, 0.0 }
   0x9   :  { %v28_v9 = vadd.f32 %v27_v8, %v24_v6  ;;  %p144_p3 = por %p143_p2, %p142_p1 }
   0xb   :  { %v29_v10 = vrot.slane %v28_v9, 4  ;;  %p145_p4 = pnand %p144_p3, %p138_p0 }
   0xd   :  { %v30_v11 = vadd.f32 %v29_v10, %v28_v9 }
   0xf   :  { %v31_v12 = vrot.slane %v30_v11, 2 }
  0x11   :  { %v32_v13 = vadd.f32 %v31_v12, %v30_v11 }
  0x13   :  { %v33_v14 = vrot.slane %v32_v13, 1 }
  0x15   :  { %v34_v15 = vadd.f32 %v33_v14, %v32_v13 }
  0x17   :  { %v119_v16 = vclamps-f32 %v34_v15, 0.9999999 }
  0x19   :  { %v38_v17 = vmul.f32 %v119_v16, %v119_v16  ;;  %v37_v22 = vmul.f32 0.87758255, %v119_v16 }
  0x1b   :  { %v39_v18 = vsub.f32 1.0, %v38_v17 }
  0x1d   :  { %121 = vrsqrt.f32 %v39_v18  ;;  %vm42_vm3 = vcmp.eq.f32.partialorder %v39_v18, inf  ;;  %v45_v20 = vand.u32 2147483648, %v39_v18  ;;  %vm44_vm4 = vcmp.eq.f32.partialorder %v39_v18, 0.0 }
  0x27   :  { %v122_v19 = vpop.eup %121 }
  0x28   :  { %v41_v21 = vmul.f32 %v122_v19, %v39_v18 }
  0x2a   :  { %v43_v23 = vsel %vm42_vm3, %v39_v18, %v41_v21 }
  0x2b   :  { %v46_v24 = vsel %vm44_vm4, %v45_v20, %v43_v23 }
  0x2c   :  { %v47_v25 = vmul.f32 0.47942555, %v46_v24 }
  0x2e   :  { %v48_v26 = vsub.f32 %v37_v22, %v47_v25 }
  0x30   :  { %v49_v27 = vsub.f32 %v48_v26, %v119_v16 }
  0x32   :  { %v50_v28 = vadd.f32 %v49_v27, %v12_v3  ;;  %v51_v29 = vadd.f32 %v49_v27, %v13_v4  ;;  %v96_v30 = vadd.f32 %v49_v27, %v34_v15 }
  0x34   :  { %v52_v31 = vsel %vm22_vm0, %v50_v28, %v12_v3  ;;  %v53_v32 = vsel %vm23_vm2, %v51_v29, %v13_v4  ;;  %v97_v42 = vmul.f32 64.0, %v96_v30 }
  0x35   :  { %v54_v33 = vmul.f32 64.0, %v52_v31  ;;  %v55_v34 = vmul.f32 64.0, %v53_v32 }
  0x37   :  { %v56_v35 = vsel %vm26_vm1, %v55_v34, -inf }
  0x38   :  { %v57_v36 = vmax.f32 %v54_v33, %v56_v35 }
  0x3a   :  { %v58_v37 = vrot.slane %v57_v36, 4 }
  0x3c   :  { %v59_v38 = vmax.f32 %v57_v36, %v58_v37 }
  0x3e   :  { %v60_v39 = vrot.slane %v59_v38, 2 }
  0x40   :  { %v61_v40 = vmax.f32 %v59_v38, %v60_v39 }
  0x42   :  { %v62_v41 = vrot.slane %v61_v40, 1 }
  0x44   :  { %v63_v43 = vmax.f32 %v61_v40, %v62_v41 }
  0x46   :  { %v64_v44 = vsub.f32 %v54_v33, %v63_v43  ;;  %v65_v45 = vsub.f32 %v55_v34, %v63_v43  ;;  %v98_v46 = vsub.f32 %v97_v42, %v63_v43 }
  0x48   :  { %v66_v47 = vmul.f32 1.442695, %v64_v44  ;;  %v68_v48 = vmul.f32 1.442695, %v65_v45  ;;  %v99_v7 = vmul.f32 1.442695, %v98_v46 }
  0x4a   :  { %123 = vpow2.f32 %v66_v47 }
  0x4b   :  { %125 = vpow2.f32 %v68_v48 }
  0x54   :  { %v124_v49 = vpop.eup %123 }
  0x55   :  { %v126_v50 = vpop.eup %125 }
  0x56   :  { %v70_v51 = vsel %vm26_vm1, %v126_v50, 0.0 }
  0x57   :  { %v71_v52 = vadd.f32 %v124_v49, %v70_v51 }
  0x59   :  { %v72_v53 = vrot.slane %v71_v52, 4 }
  0x5b   :  { %v73_v54 = vadd.f32 %v72_v53, %v71_v52 }
  0x5d   :  { %v74_v55 = vrot.slane %v73_v54, 2 }
  0x5f   :  { %v75_v56 = vadd.f32 %v74_v55, %v73_v54 }
  0x61   :  { %v76_v57 = vrot.slane %v75_v56, 1 }
  0x63   :  { %v77_v58 = vadd.f32 %v76_v57, %v75_v56 }
  0x65   :  { %127 = vrcp.f32 %v77_v58 }
  0x6f   :  { %v128_v59 = vpop.eup %127 }
  0x70   :  { %v80_v60 = vmul.f32 %v128_v59, %v124_v49  ;;  %v81_v61 = vmul.f32 %v128_v59, %v126_v50 }
  0x72   :  { %v82_v62 = vmul.f32 1.442695, %v80_v60  ;;  %v84_v63 = vmul.f32 1.442695, %v81_v61 }
  0x74   :  { %129 = vpow2.f32 %v82_v62 }
  0x75   :  { %131 = vpow2.f32 %v84_v63 }
  0x76   :  { %133 = vpow2.f32 %v99_v7 }
  0x7e   :  { %v130_v0 = vpop.eup %129 }
  0x7f   :  { %v132_v1 = vpop.eup %131 }
  0x80   :  { %v86_v2 = vsel %vm26_vm1, %v132_v1, 0.0  ;;  %v134_v11 = vpop.eup %133 }
  0x81   :  { %v87_v3 = vadd.f32 %v130_v0, %v86_v2  ;;  %v101_v12 = vmul.f32 %v134_v11, %v128_v59 }
  0x83   :  { %v88_v4 = vrot.slane %v87_v3, 4 }
  0x85   :  { %v89_v5 = vadd.f32 %v88_v4, %v87_v3 }
  0x87   :  { %v90_v6 = vrot.slane %v89_v5, 2 }
  0x89   :  { %v91_v8 = vadd.f32 %v90_v6, %v89_v5 }
  0x8b   :  { %v92_v9 = vrot.slane %v91_v8, 1 }
  0x8d   :  { %v93_v10 = vadd.f32 %v92_v9, %v91_v8 }
  0x8f   :  { %135 = vlog2.f32 %v93_v10 }
  0x99   :  { %v136_v13 = vpop.eup %135 }
  0x9a   :  { %v95_v14 = vmul.f32 0.6931472, %v136_v13 }
  0x9c   :  { %v102_v15 = vsub.f32 %v95_v14, %v101_v12 }
  0x9e   :  { %103 = vst [vmem:[#allocation2] sm:$0x1] %v102_v15 }
  0x9f   :  { %148 = shalt.err (!%p145_p4)
}
  0xa0   :  { %s149_s19 = scalar_lea.hbm %s208_s2, 16 }
  0xa1   :  { %p150_p5 = scmp.ne.s32.totalorder %s208_s2, %s149_s19  ;;  %p153_p6 = scmp.lt.u32.totalorder %s149_s19, %s208_s2 }
  0xa3   :  { %p155_p7 = pnand %p153_p6, %p150_p5 }
  0xa5   :  { %158 = shalt.err (!%p155_p7)
}
  0xa6   :  { %113 = dma.vmem_to_hbm [thread:$0]  %s111_s1, 16, %s208_s2, [#allocation3]  }
  0xa7   :  { %159 = dma.done.wait [#allocation3], 16  }
  0xa8   :  { %160 = vsyncadd [#allocation3], 4294967280 }
  0xa9   :  { %117 = vsyncpa [#allocation3], 1 }

</bundles_post_ra>
